<compile_context>
chip_gen: v7x
topology: tpu7x:2x2x1
jax: 0.10.0
libtpu: 0.0.40
codegen_flags: <defaults>
</compile_context>

<pallas_src>
import functools
import math

import jax
import jax.numpy as jnp
from jax.experimental import pallas as pl
from jax.experimental.pallas import tpu as pltpu

LANES = 128
DEFAULT_ROWS_PER_TILE = 8192          # 8192 x 128 f32 = 4 MiB per input tile
VMEM_LIMIT_BYTES = 40 * 1024 * 1024   # 16 MiB double-buffered inputs + headroom


def _static_pow(x, p):
    """x ** p with p a *static* Python scalar.

    Integral exponents (incl. negative) use exact exponentiation-by-squaring
    (no EUP transcendentals, no NaN for negative bases); only genuinely
    non-integral exponents fall back to float pow.
    """
    try:
        pf = float(p)
    except (TypeError, ValueError):      # traced exponent: best effort
        return x ** p
    if not (math.isfinite(pf) and pf.is_integer()):
        return x ** jnp.float32(pf)
    n = int(abs(pf))
    if n == 0:
        return jnp.ones_like(x)
    result = None
    base = x
    while n:
        if n & 1:
            result = base if result is None else result * base
        n >>= 1
        if n:
            base = base * base
    if pf < 0:
        result = jnp.float32(1.0) / result
    return result


def _logcosh_kernel(label_ref, pred_ref, *out_refs, n_rows, rows_per_tile,
                    steps_per_core, may_need_mask, masked, weighted,
                    w0, w1, zero_value):
    if masked:
        sum_ref, cnt_ref = out_refs
    else:
        (sum_ref,) = out_refs
        cnt_ref = None

    c = pl.program_id(0)   # TensorCore split ("parallel")
    i = pl.program_id(1)   # per-core reduction steps ("arbitrary")

    # The output blocks are indexed only by `c`, so they stay VMEM-resident
    # across the `i` axis and act as the accumulators.
    @pl.when(i == 0)
    def _init():
        sum_ref[...] = jnp.zeros_like(sum_ref)
        if masked:
            cnt_ref[...] = jnp.zeros_like(cnt_ref)

    label = label_ref[...].astype(jnp.float32)
    pred = pred_ref[...].astype(jnp.float32)

    zv = jnp.float32(zero_value)
    mask = None
    if masked:
        mask = jnp.logical_or(label > zv, pred > zv)
        pred = jnp.where(mask, pred, zv)

    # Overflow-safe log-cosh: log(cosh(x)) = |x| + log(1 + exp(-2|x|)) - log(2)
    # (keeps the reference's +1e-12 shift).  2 EUP transcendentals/element.
    x = (label - pred) + jnp.float32(1e-12)
    ax = jnp.abs(x)
    log_cosh = ax + jnp.log(1.0 + jnp.exp(-2.0 * ax)) - jnp.float32(math.log(2.0))

    if weighted:
        lp = _static_pow(label, w1)
        log_cosh = jnp.exp(jnp.float32(w0) * lp) * log_cosh

    cnt_val = mask.astype(jnp.int32) if masked else None

    def _accumulate(apply_row_mask):
        lc = log_cosh
        cv = cnt_val
        if apply_row_mask:
            gb = c * steps_per_core + i
            row_idx = jax.lax.broadcasted_iota(jnp.int32, lc.shape, 0)
            valid = (gb * rows_per_tile + row_idx) < n_rows
            lc = jnp.where(valid, lc, jnp.float32(0.0))
            if masked:
                cv = jnp.where(valid, cv, 0)
        # (rows_per_tile,128) -> (rows_per_tile//8, 8, 128): minor (8,128) dims
        # line up with the native vreg tiling, so this is a free view; summing
        # over axis 0 is pure vreg adds (same VALU count, far less VMEM traffic
        # than a full-tile accumulator).
        sum_ref[...] += jnp.sum(lc.reshape(rows_per_tile // 8, 8, LANES), axis=0)
        if masked:
            cnt_ref[...] += jnp.sum(cv.reshape(rows_per_tile // 8, 8, LANES), axis=0)

    if may_need_mask:
        gb = c * steps_per_core + i
        needs_mask = (gb + 1) * rows_per_tile > n_rows

        @pl.when(jnp.logical_not(needs_mask))
        def _fast():
            _accumulate(False)

        @pl.when(needs_mask)
        def _tail():
            _accumulate(True)
    else:
        _accumulate(False)


def log_cosh_loss(label, pred, *, masked=False, weighted_truth=False,
                  weights_params=None, zero_value=0, rows_per_tile=None):
    """Pallas implementation of LogCoshLoss.forward(label, pred)."""
    assert label.shape == pred.shape
    n_valid = int(math.prod(label.shape))

    flat_l = jnp.reshape(label, (-1,))
    flat_p = jnp.reshape(pred, (-1,))

    # Lane alignment: only the sub-128 remainder (rare) is padded with
    # zero_value, which contributes ~0 to the sum and 0 to the mask count.
    # TODO(synk): this still costs one extra HBM pass for non-128-multiple sizes.
    if n_valid % LANES != 0:
        pad = LANES - (n_valid % LANES)
        flat_l = jnp.pad(flat_l, (0, pad), constant_values=float(zero_value))
        flat_p = jnp.pad(flat_p, (0, pad), constant_values=float(zero_value))

    n_rows = flat_l.shape[0] // LANES
    label2d = jnp.reshape(flat_l, (n_rows, LANES))
    pred2d = jnp.reshape(flat_p, (n_rows, LANES))

    if rows_per_tile is None:
        rows_per_tile = DEFAULT_ROWS_PER_TILE
    # Multiple of 8 (vreg sublanes) so the in-kernel (.,8,128) reduce is a view.
    rows_per_tile = max(8, (min(rows_per_tile, n_rows) // 8) * 8)

    blocks_total = pl.cdiv(n_rows, rows_per_tile)
    num_cores = 2 if blocks_total >= 2 else 1      # v7x: 2 TCs; no-op elsewhere
    steps_per_core = pl.cdiv(blocks_total, num_cores)
    grid = (num_cores, steps_per_core)
    # Mask is needed if any (core, step) tile overhangs n_rows (partial last
    # block and/or the phantom block created by the per-core split).
    may_need_mask = (num_cores * steps_per_core * rows_per_tile) != n_rows

    max_block = blocks_total - 1

    def in_map(c, i):
        # Clamp the (rare) phantom block of the 2-core split back in range;
        # its rows are fully masked out in-kernel anyway.
        return (jnp.minimum(c * steps_per_core + i, max_block), 0)

    in_specs = [pl.BlockSpec((rows_per_tile, LANES), in_map),
                pl.BlockSpec((rows_per_tile, LANES), in_map)]

    # Per-core resident (8,128) accumulator block; lane-dense output.
    acc_spec = pl.BlockSpec((8, LANES), lambda c, i: (c, 0))

    weighted = bool(weighted_truth and weights_params is not None
                    and len(weights_params) == 2)
    w0 = weights_params[0] if weighted else None
    w1 = weights_params[1] if weighted else None

    kernel = functools.partial(
        _logcosh_kernel,
        n_rows=n_rows,
        rows_per_tile=rows_per_tile,
        steps_per_core=steps_per_core,
        may_need_mask=may_need_mask,
        masked=masked,
        weighted=weighted,
        w0=w0,
        w1=w1,
        zero_value=zero_value,
    )

    if masked:
        out_shape = (jax.ShapeDtypeStruct((num_cores * 8, LANES), jnp.float32),
                     jax.ShapeDtypeStruct((num_cores * 8, LANES), jnp.int32))
        out_specs = [acc_spec, acc_spec]
    else:
        out_shape = jax.ShapeDtypeStruct((num_cores * 8, LANES), jnp.float32)
        out_specs = acc_spec

    result = pl.pallas_call(
        kernel,
        out_shape=out_shape,
        grid_spec=pltpu.PrefetchScalarGridSpec(
            num_scalar_prefetch=0,
            grid=grid,
            in_specs=in_specs,
            out_specs=out_specs,
        ),
        compiler_params=pltpu.CompilerParams(
            dimension_semantics=("parallel", "arbitrary"),
            vmem_limit_bytes=VMEM_LIMIT_BYTES),
    )(label2d, pred2d)

    if masked:
        out_sum, out_cnt = result
        total = jnp.sum(out_sum)
        len_mask = jnp.sum(out_cnt).astype(jnp.float32)
        denom = jnp.where(len_mask > jnp.float32(zero_value),
                          len_mask, jnp.float32(1.0))
        return total / denom
    return jnp.sum(result) / jnp.float32(n_valid)


def _reference(label, pred, *, masked=False, weighted_truth=False,
               weights_params=None, zero_value=0):
    label = label.astype(jnp.float32)
    pred = pred.astype(jnp.float32)
    if masked:
        mask = jnp.logical_or(label > zero_value, pred > zero_value)
        pred = jnp.where(mask, pred, jnp.float32(zero_value))
    ey_t = label - pred
    log_cosh = jnp.log(jnp.cosh(ey_t + 1e-12))
    if weighted_truth and weights_params is not None and len(weights_params) == 2:
        log_cosh = jnp.exp(weights_params[0] * label ** weights_params[1]) * log_cosh
    if masked:
        len_mask = jnp.sum(mask).astype(jnp.float32)
        denom = jnp.where(len_mask > zero_value, len_mask, jnp.float32(1.0))
        return jnp.sum(log_cosh) / denom
    return jnp.mean(log_cosh)


if __name__ == "__main__":
    key = jax.random.PRNGKey(0)
    k1, k2, k3, k4, k5, k6 = jax.random.split(key, 6)

    # Small NCHW-shaped synthetic "label" / "pred" tensors.
    label = jax.random.uniform(k1, (2, 4, 16, 16), jnp.float32, -0.5, 2.0)
    pred = jax.random.uniform(k2, (2, 4, 16, 16), jnp.float32, -0.5, 2.0)
    # Larger shape; with a small rows_per_tile override it exercises multiple
    # grid steps, the 2-core split (incl. the clamped phantom block) and the
    # gated tail-row mask.
    label_big = jax.random.uniform(k3, (2, 8, 130, 128), jnp.float32, -0.5, 2.0)
    pred_big = jax.random.uniform(k4, (2, 8, 130, 128), jnp.float32, -0.5, 2.0)
    # Element count not a multiple of 128 (lane-pad path).
    label_odd = jax.random.uniform(k5, (2, 3, 15, 15), jnp.float32, -0.5, 2.0)
    pred_odd = jax.random.uniform(k6, (2, 3, 15, 15), jnp.float32, -0.5, 2.0)

    configs = [
        dict(masked=False, weighted_truth=False, weights_params=None, zero_value=0),
        dict(masked=True, weighted_truth=False, weights_params=None, zero_value=0),
        dict(masked=True, weighted_truth=True, weights_params=(0.05, 2), zero_value=0),
        dict(masked=True, weighted_truth=True, weights_params=(0.01, 3), zero_value=0),
    ]

    cases = [
        (label, pred, None),          # single block, single core, no masking
        (label_big, pred_big, None),  # single big block
        (label_big, pred_big, 512),   # multi-step + 2-core split + tail mask
        (label_odd, pred_odd, None),  # lane-pad path
    ]

    for lbl, prd, rpt in cases:
        for cfg in configs:
            out = jax.block_until_ready(
                log_cosh_loss(lbl, prd, rows_per_tile=rpt, **cfg))
            ref = _reference(lbl, prd, **cfg)
            if not jnp.allclose(out, ref, rtol=1e-5, atol=1e-5):
                raise AssertionError(
                    f"mismatch shape={lbl.shape} rpt={rpt} cfg={cfg}: {out} vs {ref}")

    print("KERNEL_OK")
</pallas_src>

<mosaic_0001>
module attributes {stable_mosaic.version = 11 : i64} {
  func.func @_logcosh_kernel(%arg0: i32, %arg1: i32, %arg2: memref<16x128xf32, #tpu.memory_space<vmem>>, %arg3: memref<16x128xf32, #tpu.memory_space<vmem>>, %arg4: memref<8x128xf32, #tpu.memory_space<vmem>>) attributes {dimension_semantics = [#tpu.dimension_semantics<parallel>, #tpu.dimension_semantics<arbitrary>], iteration_bounds = array<i64: 1, 1>, scalar_prefetch = 0 : i64, scratch_operands = 0 : i64, tpu.core_type = #tpu.core_type<tc>, window_params = [{transform_indices = @transform_0, window_bounds = array<i64: 16, 128>}, {transform_indices = @transform_1, window_bounds = array<i64: 16, 128>}, {transform_indices = @transform_2, window_bounds = array<i64: 8, 128>}]} {
    %c0_i32 = arith.constant 0 : i32
    %0 = arith.cmpi eq, %arg1, %c0_i32 : i32
    %1 = arith.extui %0 : i1 to i32
    %c0_i32_0 = arith.constant 0 : i32
    %2 = arith.cmpi ne, %1, %c0_i32_0 : i32
    scf.if %2 {
      %cst_12 = arith.constant 0.000000e+00 : f32
      %23 = vector.broadcast %cst_12 : f32 to vector<8x128xf32>
      %c0_13 = arith.constant 0 : index
      %c0_14 = arith.constant 0 : index
      %24 = vector.load %arg4[%c0_13, %c0_14] : memref<8x128xf32, #tpu.memory_space<vmem>>, vector<8x128xf32>
      tpu.vector_store %arg4[%c0_13, %c0_14], %23 {strides = array<i32>} : memref<8x128xf32, #tpu.memory_space<vmem>>, vector<8x128xf32>,
    } else {
    }
    %c0 = arith.constant 0 : index
    %c0_1 = arith.constant 0 : index
    %3 = vector.load %arg2[%c0, %c0_1] : memref<16x128xf32, #tpu.memory_space<vmem>>, vector<16x128xf32>
    %c0_2 = arith.constant 0 : index
    %c0_3 = arith.constant 0 : index
    %4 = vector.load %arg3[%c0_2, %c0_3] : memref<16x128xf32, #tpu.memory_space<vmem>>, vector<16x128xf32>
    %5 = arith.subf %3, %4 : vector<16x128xf32>
    %cst = arith.constant 9.99999996E-13 : f32
    %6 = vector.broadcast %cst : f32 to vector<16x128xf32>
    %7 = arith.addf %5, %6 : vector<16x128xf32>
    %8 = math.absf %7 : vector<16x128xf32>
    %cst_4 = arith.constant -2.000000e+00 : f32
    %9 = vector.broadcast %cst_4 : f32 to vector<16x128xf32>
    %10 = arith.mulf %9, %8 : vector<16x128xf32>
    %11 = math.exp %10 : vector<16x128xf32>
    %cst_5 = arith.constant 1.000000e+00 : f32
    %12 = vector.broadcast %cst_5 : f32 to vector<16x128xf32>
    %13 = arith.addf %12, %11 : vector<16x128xf32>
    %14 = math.log %13 : vector<16x128xf32>
    %15 = arith.addf %8, %14 : vector<16x128xf32>
    %cst_6 = arith.constant 0.693147182 : f32
    %16 = vector.broadcast %cst_6 : f32 to vector<16x128xf32>
    %17 = arith.subf %15, %16 : vector<16x128xf32>
    %c0_7 = arith.constant 0 : index
    %c0_8 = arith.constant 0 : index
    %18 = vector.load %arg4[%c0_7, %c0_8] : memref<8x128xf32, #tpu.memory_space<vmem>>, vector<8x128xf32>
    %19 = vector.shape_cast %17 : vector<16x128xf32> to vector<2x8x128xf32>
    %cst_9 = arith.constant dense<0.000000e+00> : vector<8x128xf32>
    %20 = vector.multi_reduction <add>, %19, %cst_9 [0] : vector<2x8x128xf32> to vector<8x128xf32>
    %21 = arith.addf %18, %20 : vector<8x128xf32>
    %c0_10 = arith.constant 0 : index
    %c0_11 = arith.constant 0 : index
    %22 = vector.load %arg4[%c0_10, %c0_11] : memref<8x128xf32, #tpu.memory_space<vmem>>, vector<8x128xf32>
    tpu.vector_store %arg4[%c0_10, %c0_11], %21 {strides = array<i32>} : memref<8x128xf32, #tpu.memory_space<vmem>>, vector<8x128xf32>,
    return
  }
  func.func @transform_0(%arg0: i32, %arg1: i32) -> (i32, i32) {
    %c1_i32 = arith.constant 1 : i32
    %0 = arith.muli %arg0, %c1_i32 : i32
    %1 = arith.addi %0, %arg1 : i32
    %c0_i32 = arith.constant 0 : i32
    %2 = arith.minsi %1, %c0_i32 : i32
    %c0_i32_0 = arith.constant 0 : i32
    %c0_i32_1 = arith.constant 0 : i32
    return %2, %c0_i32_0 : i32, i32
  }
  func.func @transform_1(%arg0: i32, %arg1: i32) -> (i32, i32) {
    %c1_i32 = arith.constant 1 : i32
    %0 = arith.muli %arg0, %c1_i32 : i32
    %1 = arith.addi %0, %arg1 : i32
    %c0_i32 = arith.constant 0 : i32
    %2 = arith.minsi %1, %c0_i32 : i32
    %c0_i32_0 = arith.constant 0 : i32
    %c0_i32_1 = arith.constant 0 : i32
    return %2, %c0_i32_0 : i32, i32
  }
  func.func @transform_2(%arg0: i32, %arg1: i32) -> (i32, i32) {
    %c0_i32 = arith.constant 0 : i32
    %c0_i32_0 = arith.constant 0 : i32
    return %arg0, %c0_i32 : i32, i32
  }
}

</mosaic_0001>

<bundles_post_ra>
// kernel: tpu_custom_call.1
= control target key start
LH: loop header
LB: loop body
LE: loop exit
PB: predicated region body
PF: predicated region fallthrough
CT: control target
= control target key end

     0   :  { %7 = vsyncpa [#allocation3], 0  ;;  %s259_s0 = inlined_call_operand.hbm [shape: f32[16,128], index: 0, kind: input, shape index: {}]   ;;  %s260_s1 = inlined_call_operand.hbm [shape: f32[16,128], index: 1, kind: input, shape index: {}]   ;;  %s261_s2 = inlined_call_operand.hbm [shape: f32[8,128], index: 2, kind: output, shape index: {}]  }
   0x1   :  { %8 = vsyncpa [#allocation6], 0 }
   0x2   :  { %9 = vsyncpa [#allocation4], 0  ;;  %s203_s9 = smov [#allocation2]   ;;  %s131_s13 = scalar_lea.hbm %s259_s0, 256 }
   0x3   :  { %s21_s10 = sshll.u32 %s203_s9, 4  ;;  %p132_p0 = scmp.ne.s32.totalorder %s259_s0, %s131_s13  ;;  %s22_s10 = int_to_ptr.vmem [resolvable:$true] %s21_s10 }
   0x4   :  { %p135_p1 = scmp.lt.u32.totalorder %s131_s13, %s259_s0 }
   0x6   :  { %p137_p2 = pnand %p135_p1, %p132_p0 }
   0x8   :  { %140 = shalt.err (!%p137_p2)
}
   0x9   :  { %s141_s18 = scalar_lea.vmem %s22_s10, 256  ;;  %p146_p4 = scmp.lt.s32.totalorder %s22_s10, %s22_s10 }
   0xa   :  { %p142_p3 = scmp.ne.s32.totalorder %s22_s10, %s141_s18  ;;  %p147_p5 = scmp.lt.s32.totalorder %s141_s18, %s141_s18 }
   0xc   :  { %p148_p6 = por %p147_p5, %p146_p4 }
   0xe   :  { %p149_p7 = pnand %p148_p6, %p142_p3 }
  0x10   :  { %152 = shalt.err (!%p149_p7)
}
  0x11   :  { %s204_s19 = smov 128   ;;  %s205_s20 = smov 8  }
  0x12   :  { %27 = dma.hbm_to_vmem [thread:$0]  %s259_s0, 256, %s22_s10, [#allocation3], %s204_s19, %s204_s19, %s205_s20  }
  0x13   :  { %s206_s23 = smov [#allocation5]   ;;  %s153_s27 = scalar_lea.hbm %s260_s1, 256 }
  0x14   :  { %s39_s24 = sshll.u32 %s206_s23, 4  ;;  %p154_p8 = scmp.ne.s32.totalorder %s260_s1, %s153_s27  ;;  %s40_s24 = int_to_ptr.vmem [resolvable:$true] %s39_s24 }
  0x15   :  { %p157_p9 = scmp.lt.u32.totalorder %s153_s27, %s260_s1 }
  0x17   :  { %p159_p10 = pnand %p157_p9, %p154_p8 }
  0x19   :  { %162 = shalt.err (!%p159_p10)
}
  0x1a   :  { %s163_s4 = scalar_lea.vmem %s40_s24, 256  ;;  %p168_p12 = scmp.lt.s32.totalorder %s40_s24, %s40_s24 }
  0x1b   :  { %p164_p11 = scmp.ne.s32.totalorder %s40_s24, %s163_s4  ;;  %p169_p13 = scmp.lt.s32.totalorder %s163_s4, %s163_s4 }
  0x1d   :  { %p170_p0 = por %p169_p13, %p168_p12 }
  0x1f   :  { %p171_p1 = pnand %p170_p0, %p164_p11 }
  0x21   :  { %174 = shalt.err (!%p171_p1)
}
  0x22   :  { %45 = dma.hbm_to_vmem [thread:$0]  %s260_s1, 256, %s40_s24, [#allocation6], %s204_s19, %s204_s19, %s205_s20  }
  0x23   :  { %197 = dma.done.wait [#allocation3], 256  }
  0x24   :  { %198 = vsyncadd [#allocation3], 4294967040 }
  0x25   :  { %199 = dma.done.wait [#allocation6], 256  }
  0x26   :  { %200 = vsyncadd [#allocation6], 4294967040  ;;  %v65_v0 = vld [vmem:[#allocation2] sm:$0xff]  ;;  %v66_v1 = vld [vmem:[#allocation2 + $0x8] sm:$0xff]  ;;  %s207_s1 = smov [#allocation7]  }
  0x27   :  { %v67_v2 = vld [vmem:[#allocation5] sm:$0xff]  ;;  %v68_v3 = vld [vmem:[#allocation5 + $0x8] sm:$0xff]  ;;  %s101_s6 = sshll.u32 %s207_s1, 4  ;;  %s102_s6 = int_to_ptr.vmem [resolvable:$true] %s101_s6 }
  0x28   :  { %v69_v4 = vsub.f32 %v65_v0, %v67_v2  ;;  %v70_v5 = vsub.f32 %v66_v1, %v68_v3  ;;  %s175_s7 = scalar_lea.vmem %s102_s6, 128  ;;  %p180_p3 = scmp.lt.s32.totalorder %s102_s6, %s102_s6 }
  0x29   :  { %p176_p2 = scmp.ne.s32.totalorder %s102_s6, %s175_s7  ;;  %p181_p4 = scmp.lt.s32.totalorder %s175_s7, %s175_s7 }
  0x2a   :  { %v71_v6 = vadd.f32 1e-12, %v69_v4  ;;  %v72_v7 = vadd.f32 1e-12, %v70_v5 }
  0x2b   :  { %p182_p5 = por %p181_p4, %p180_p3 }
  0x2c   :  { %v73_v8 = vand.u32 2147483647, %v71_v6  ;;  %v74_v9 = vand.u32 2147483647, %v72_v7 }
  0x2d   :  { %p183_p6 = pnand %p182_p5, %p176_p2 }
  0x2e   :  { %v75_v10 = vmul.f32 -2.0, %v73_v8  ;;  %v76_v11 = vmul.f32 -2.0, %v74_v9 }
  0x30   :  { %v77_v12 = vmul.f32 1.442695, %v75_v10  ;;  %v79_v13 = vmul.f32 1.442695, %v76_v11 }
  0x32   :  { %123 = vpow2.f32 %v77_v12 }
  0x33   :  { %125 = vpow2.f32 %v79_v13 }
  0x3c   :  { %v124_v14 = vpop.eup %123 }
  0x3d   :  { %v126_v15 = vpop.eup %125  ;;  %v81_v16 = vadd.f32 1.0, %v124_v14 }
  0x3e   :  { %v82_v17 = vadd.f32 1.0, %v126_v15 }
  0x3f   :  { %127 = vlog2.f32 %v81_v16 }
  0x40   :  { %129 = vlog2.f32 %v82_v17 }
  0x49   :  { %v128_v18 = vpop.eup %127 }
  0x4a   :  { %v130_v19 = vpop.eup %129  ;;  %v84_v20 = vmul.f32 0.6931472, %v128_v18 }
  0x4b   :  { %v86_v21 = vmul.f32 0.6931472, %v130_v19 }
  0x4c   :  { %v87_v22 = vadd.f32 %v84_v20, %v73_v8 }
  0x4d   :  { %v88_v23 = vadd.f32 %v86_v21, %v74_v9 }
  0x4e   :  { %v115_v24 = vadd.f32 -0.6931472, %v87_v22 }
  0x4f   :  { %v116_v25 = vadd.f32 -0.6931472, %v88_v23 }
  0x51   :  { %v92_v26 = vadd.f32 %v116_v25, %v115_v24 }
  0x53   :  { %94 = vst [vmem:[#allocation7] sm:$0xff] %v92_v26 }
  0x54   :  { %186 = shalt.err (!%p183_p6)
}
  0x55   :  { %s187_s10 = scalar_lea.hbm %s261_s2, 128 }
  0x56   :  { %p188_p7 = scmp.ne.s32.totalorder %s261_s2, %s187_s10  ;;  %p191_p8 = scmp.lt.u32.totalorder %s187_s10, %s261_s2 }
  0x58   :  { %p193_p9 = pnand %p191_p8, %p188_p7 }
  0x5a   :  { %196 = shalt.err (!%p193_p9)
}
  0x5b   :  { %104 = dma.vmem_to_hbm [thread:$0]  %s102_s6, 128, %s261_s2, [#allocation4]  }
  0x5c   :  { %201 = dma.done.wait [#allocation4], 128  }
  0x5d   :  { %202 = vsyncadd [#allocation4], 4294967168 }
  0x5e   :  { %108 = vsyncpa [#allocation3], 1 }
  0x5f   :  { %109 = vsyncpa [#allocation6], 1 }
  0x60   :  { %110 = vsyncpa [#allocation4], 1 }

</bundles_post_ra>
